<compile_context>
chip_gen: v6e
topology: v6e:2x2x1
jax: 0.10.0
libtpu: 0.0.40
codegen_flags: <defaults>
</compile_context>

<pallas_src>
import math

import jax
import jax.numpy as jnp
from jax.experimental import pallas as pl
from jax.experimental.pallas import tpu as pltpu


def _round_up(x, m):
    return (x + m - 1) // m * m


def _vmem_capacity_bytes():
    """Physical VMEM of this TPU generation (64 MiB v7x, 128 MiB v5e/v6e)."""
    try:
        cap = getattr(pltpu.get_tpu_info(), "vmem_capacity_bytes", None)
        if cap:
            return int(cap)
    except Exception:
        pass
    return 64 * 1024 * 1024  # conservative fallback (v7x-sized VMEM)


def _vmem_limit(working_set_bytes, capacity_bytes):
    # 1.5x headroom over the double-buffered working set, floored at 32 MiB,
    # capped below the physical VMEM of this generation (96 MiB on v5e/v6e,
    # 48 MiB on v7x).
    limit = max(int(1.5 * working_set_bytes) + (2 << 20), 32 << 20)
    return int(min(limit, int(0.75 * capacity_bytes)))


# ---------------------------------------------------------------------------
# Kernels
# ---------------------------------------------------------------------------
def _support_kernel(x_ref, w_ref, s_ref):
    # support_tile = x_tile @ W   (MXU, f32 accumulation, bf16 output)
    s_ref[...] = jnp.dot(
        x_ref[...], w_ref[...], preferred_element_type=jnp.float32
    ).astype(s_ref.dtype)


def _make_aggregate_kernel(*, has_bias, support_resident, tk, n_ctr, n_cols,
                           mask_cols, compute_dtype):
    """Aggregation: out = adj @ support (+ bias), accumulated in the f32 o_ref."""

    def kernel(*refs):
        it = iter(refs)
        adj_ref = next(it)
        s_ref = next(it)
        b_ref = next(it) if has_bias else None
        o_ref = next(it)

        k = pl.program_id(1)

        # Fold the bias into the accumulator init (no epilogue add).
        @pl.when(k == 0)
        def _():
            if has_bias:
                o_ref[...] = jnp.broadcast_to(b_ref[...], o_ref.shape)
            else:
                o_ref[...] = jnp.zeros_like(o_ref)

        a = adj_ref[...]
        if mask_cols:
            # Ragged last column tile: zero out columns >= N so stale
            # out-of-bounds adj values never reach the MXU.
            col = jax.lax.broadcasted_iota(jnp.int32, (1, tk), 1) + k * tk
            a = jnp.where(col < n_cols, a, 0)
        # adj streams from HBM in its original dtype; cast per-tile for bf16 MXU.
        a = a.astype(compute_dtype)

        if support_resident and tk != n_ctr:
            # support is VMEM-resident; slice the current contraction chunk.
            start = pl.multiple_of(k * tk, tk)
            s = s_ref[pl.ds(start, tk), :]
        else:
            s = s_ref[...]

        # Output block is resident across the k axis -> accumulate in place.
        o_ref[...] += jnp.dot(a, s, preferred_element_type=jnp.float32)

    return kernel


# ---------------------------------------------------------------------------
# Wrapper
# ---------------------------------------------------------------------------
def graph_convolution(x, adj, weight, bias=None, *, compute_dtype=jnp.bfloat16):
    """x: [N, F_in], adj: [N, N] dense, weight: [F_in, F_out], bias: [F_out]|None."""
    n, f_in = x.shape
    f_out = weight.shape[1]
    out_dtype = x.dtype
    cb = jnp.dtype(compute_dtype).itemsize
    adj_b = jnp.dtype(adj.dtype).itemsize

    # ---- generation-aware budgets -------------------------------------------
    vmem_cap = _vmem_capacity_bytes()
    vmem_budget = min(int(0.55 * vmem_cap), 100 << 20)

    # ---- tile selection ------------------------------------------------------
    # Lane-dense stores: pad F_out to a multiple of 128 (sliced off at the end).
    f_out_pad = _round_up(f_out, 128)

    # Output-row tile: 512 (MXU-aligned, multi-MiB adj tiles); mid-size graphs
    # get >= 2 row tiles so both v7x TensorCores stay busy on the parallel axis.
    if n > 512:
        tm = 512
    elif n > 256:
        tm = _round_up(pl.cdiv(n, 2), 8)
    else:
        tm = n

    # Contraction (adj-column / support-row) tile: as large as the budget
    # allows; full extent for small graphs (single k step, no masking needed).
    tk_max = 4096 if vmem_budget >= (64 << 20) else 2048   # v5e/v6e vs v7x
    tk = min(n, tk_max)
    while tk > 512 and (2 * tm * tk * adj_b + 2 * tm * f_out_pad * 4
                        + 2 * tk * f_out_pad * cb + (1 << 20)) > vmem_budget:
        tk = max(512, _round_up(tk // 2, 128))   # rare: very large F_out

    n_ctr_pad = _round_up(n, tk)       # support rows (cheap zero-padding of x)
    mask_cols = (n % tk) != 0

    # ---- small operands: cast / pad in the wrapper (O(N*F), cheap) -----------
    x_c = x.astype(compute_dtype)
    if n_ctr_pad != n:
        x_c = jnp.pad(x_c, ((0, n_ctr_pad - n), (0, 0)))   # zero rows -> zero support
    w_c = weight.astype(compute_dtype)
    if f_out_pad != f_out:
        w_c = jnp.pad(w_c, ((0, 0), (0, f_out_pad - f_out)))

    # ---- kernel 1: support = x @ W (computed exactly once) -------------------
    tm_s = 512 if n_ctr_pad > 512 else n_ctr_pad
    sup_ws = 2 * (tm_s * f_in + f_in * f_out_pad + tm_s * f_out_pad) * cb
    support = pl.pallas_call(
        _support_kernel,
        out_shape=jax.ShapeDtypeStruct((n_ctr_pad, f_out_pad), compute_dtype),
        grid_spec=pltpu.PrefetchScalarGridSpec(
            num_scalar_prefetch=0,
            grid=(pl.cdiv(n_ctr_pad, tm_s),),
            in_specs=[
                pl.BlockSpec((tm_s, f_in), lambda i: (i, 0)),
                pl.BlockSpec((f_in, f_out_pad), lambda i: (0, 0)),   # W resident
            ],
            out_specs=pl.BlockSpec((tm_s, f_out_pad), lambda i: (i, 0)),
        ),
        compiler_params=pltpu.CompilerParams(
            dimension_semantics=("parallel",),
            vmem_limit_bytes=_vmem_limit(sup_ws, vmem_cap),
        ),
        cost_estimate=pl.CostEstimate(
            flops=int(2 * n_ctr_pad * f_in * f_out_pad),
            transcendentals=0,
            bytes_accessed=int((n_ctr_pad * f_in + f_in * f_out_pad
                                + n_ctr_pad * f_out_pad) * cb),
        ),
    )(x_c, w_c)

    # ---- kernel 2: output = adj @ support (+ bias) ----------------------------
    adj_bufs = 2 * tm * tk * adj_b
    out_bufs = 2 * tm * f_out_pad * 4
    bias_bufs = 2 * f_out_pad * 4 if bias is not None else 0
    sup_res_bytes = 2 * n_ctr_pad * f_out_pad * cb     # resident (worst case 2 bufs)
    sup_str_bytes = 2 * tk * f_out_pad * cb            # streamed per-k tile
    support_resident = (adj_bufs + out_bufs + bias_bufs + sup_res_bytes
                        + (1 << 20)) <= vmem_budget
    sup_bufs = sup_res_bytes if support_resident else sup_str_bytes
    agg_ws = adj_bufs + out_bufs + bias_bufs + sup_bufs

    grid = (pl.cdiv(n, tm), n_ctr_pad // tk)
    adj_spec = pl.BlockSpec((tm, tk), lambda i, k: (i, k))
    if support_resident:
        # Fetched from HBM once total; sliced per k-step inside the kernel.
        sup_spec = pl.BlockSpec((n_ctr_pad, f_out_pad), lambda i, k: (0, 0))
        sup_hbm = n_ctr_pad * f_out_pad * cb
    else:
        # Fallback for huge graphs: stream support per contraction tile.
        sup_spec = pl.BlockSpec((tk, f_out_pad), lambda i, k: (k, 0))
        sup_hbm = grid[0] * n_ctr_pad * f_out_pad * cb
    out_spec = pl.BlockSpec((tm, f_out_pad), lambda i, k: (i, 0))

    in_specs = [adj_spec, sup_spec]
    operands = [adj, support]
    if bias is not None:
        b_pad = bias.astype(jnp.float32)
        if f_out_pad != f_out:
            b_pad = jnp.pad(b_pad, (0, f_out_pad - f_out))
        in_specs.append(pl.BlockSpec((1, f_out_pad), lambda i, k: (0, 0)))
        operands.append(b_pad.reshape(1, f_out_pad))

    kernel = _make_aggregate_kernel(
        has_bias=bias is not None, support_resident=support_resident,
        tk=tk, n_ctr=n_ctr_pad, n_cols=n, mask_cols=mask_cols,
        compute_dtype=compute_dtype)

    out = pl.pallas_call(
        kernel,
        out_shape=jax.ShapeDtypeStruct((n, f_out_pad), jnp.float32),
        grid_spec=pltpu.PrefetchScalarGridSpec(
            num_scalar_prefetch=0,
            grid=grid,
            in_specs=in_specs,
            out_specs=out_spec,
        ),
        compiler_params=pltpu.CompilerParams(
            dimension_semantics=("parallel", "arbitrary"),
            vmem_limit_bytes=_vmem_limit(agg_ws, vmem_cap),
        ),
        cost_estimate=pl.CostEstimate(
            flops=int(2 * n * n_ctr_pad * f_out_pad),
            transcendentals=0,
            bytes_accessed=int(n * n * adj_b + sup_hbm + n * f_out_pad * 4),
        ),
    )(*operands)

    if f_out_pad != f_out:
        out = out[:, :f_out]
    return out.astype(out_dtype) if out.dtype != out_dtype else out


# ---------------------------------------------------------------------------
# Demo / correctness check
# ---------------------------------------------------------------------------
if __name__ == "__main__":
    key = jax.random.PRNGKey(0)
    k_x, k_adj, k_w, k_b, k_x2, k_adj2, k_w2, k_b2 = jax.random.split(key, 8)

    # --- case 1: N=64, 32 -> 128 (F_out already lane-aligned) -----------------
    N, in_features, out_features = 64, 32, 128
    stdv = 1.0 / math.sqrt(out_features)
    weight = jax.random.uniform(k_w, (in_features, out_features), jnp.float32,
                                minval=-stdv, maxval=stdv)
    bias = jax.random.uniform(k_b, (out_features,), jnp.float32,
                              minval=-stdv, maxval=stdv)
    x = jax.random.normal(k_x, (N, in_features), jnp.float32)
    adj = (jax.random.uniform(k_adj, (N, N)) < 0.2).astype(jnp.float32)
    adj = adj + jnp.eye(N, dtype=jnp.float32)
    adj = adj / jnp.sum(adj, axis=1, keepdims=True)

    out = jax.block_until_ready(graph_convolution(x, adj, weight, bias))
    ref = adj @ (x @ weight) + bias
    assert out.shape == (N, out_features)
    # bf16 MXU operands vs f32 reference -> slightly looser tolerance
    assert jnp.allclose(out, ref, atol=2e-2, rtol=2e-2)

    out_nb = jax.block_until_ready(graph_convolution(x, adj, weight, None))
    ref_nb = adj @ (x @ weight)
    assert jnp.allclose(out_nb, ref_nb, atol=2e-2, rtol=2e-2)

    # --- case 2: pygcn-like ragged sizes (N=50, 16 -> 7; F_out padded to 128) --
    N2, in2, out2f = 50, 16, 7
    stdv2 = 1.0 / math.sqrt(out2f)
    weight2 = jax.random.uniform(k_w2, (in2, out2f), jnp.float32,
                                 minval=-stdv2, maxval=stdv2)
    bias2 = jax.random.uniform(k_b2, (out2f,), jnp.float32,
                               minval=-stdv2, maxval=stdv2)
    x2 = jax.random.normal(k_x2, (N2, in2), jnp.float32)
    adj2 = (jax.random.uniform(k_adj2, (N2, N2)) < 0.3).astype(jnp.float32)
    adj2 = adj2 + jnp.eye(N2, dtype=jnp.float32)
    adj2 = adj2 / jnp.sum(adj2, axis=1, keepdims=True)

    out2 = jax.block_until_ready(graph_convolution(x2, adj2, weight2, bias2))
    ref2 = adj2 @ (x2 @ weight2) + bias2
    assert out2.shape == (N2, out2f)
    assert jnp.allclose(out2, ref2, atol=2e-2, rtol=2e-2)

    print("KERNEL_OK")
</pallas_src>

<mosaic_0001>
module attributes {stable_mosaic.version = 11 : i64} {
  func.func @_support_kernel(%arg0: i32, %arg1: memref<64x32xbf16, #tpu.memory_space<vmem>>, %arg2: memref<32x128xbf16, #tpu.memory_space<vmem>>, %arg3: memref<64x128xbf16, #tpu.memory_space<vmem>>) attributes {dimension_semantics = [#tpu.dimension_semantics<parallel>], iteration_bounds = array<i64: 1>, scalar_prefetch = 0 : i64, scratch_operands = 0 : i64, tpu.core_type = #tpu.core_type<tc>, window_params = [{transform_indices = @transform_0, window_bounds = array<i64: 64, 32>}, {pipeline_mode = #tpu.pipeline_mode<synchronous>, transform_indices = @transform_1, window_bounds = array<i64: 32, 128>}, {transform_indices = @transform_2, window_bounds = array<i64: 64, 128>}]} {
    %c0 = arith.constant 0 : index
    %c0_0 = arith.constant 0 : index
    %0 = vector.load %arg1[%c0, %c0_0] : memref<64x32xbf16, #tpu.memory_space<vmem>>, vector<64x32xbf16>
    %c0_1 = arith.constant 0 : index
    %c0_2 = arith.constant 0 : index
    %1 = vector.load %arg2[%c0_1, %c0_2] : memref<32x128xbf16, #tpu.memory_space<vmem>>, vector<32x128xbf16>
    %cst = arith.constant dense<0.000000e+00> : vector<64x128xf32>
    %2 = tpu.matmul %0, %1, %cst {dimension_numbers = #tpu.dot_dimension_numbers<[1], [0], [0], [1], [0, 0, 1, 1], [], []>} : vector<64x32xbf16>, vector<32x128xbf16>, vector<64x128xf32> -> vector<64x128xf32>
    %3 = arith.truncf %2 : vector<64x128xf32> to vector<64x128xbf16>
    %c0_3 = arith.constant 0 : index
    %c0_4 = arith.constant 0 : index
    %4 = vector.load %arg3[%c0_3, %c0_4] : memref<64x128xbf16, #tpu.memory_space<vmem>>, vector<64x128xbf16>
    tpu.vector_store %arg3[%c0_3, %c0_4], %3 {strides = array<i32>} : memref<64x128xbf16, #tpu.memory_space<vmem>>, vector<64x128xbf16>,
    return
  }
  func.func @transform_0(%arg0: i32) -> (i32, i32) {
    %c0_i32 = arith.constant 0 : i32
    %c0_i32_0 = arith.constant 0 : i32
    return %arg0, %c0_i32 : i32, i32
  }
  func.func @transform_1(%arg0: i32) -> (i32, i32) {
    %c0_i32 = arith.constant 0 : i32
    %c0_i32_0 = arith.constant 0 : i32
    %c0_i32_1 = arith.constant 0 : i32
    return %c0_i32, %c0_i32_0 : i32, i32
  }
  func.func @transform_2(%arg0: i32) -> (i32, i32) {
    %c0_i32 = arith.constant 0 : i32
    %c0_i32_0 = arith.constant 0 : i32
    return %arg0, %c0_i32 : i32, i32
  }
}

</mosaic_0001>

<bundles_post_ra>
// kernel: tpu_custom_call.1
= control target key start
LH: loop header
LB: loop body
LE: loop exit
PB: predicated region body
PF: predicated region fallthrough
CT: control target
= control target key end

     0   :  { %vm57_vm0 = vcmask 261120   ;;  %s332_s0 = inlined_call_operand.vmem [shape: bf16[64,32], index: 0, kind: input, shape index: {}]   ;;  %s333_s1 = inlined_call_operand.vmem [shape: bf16[32,128], index: 1, kind: input, shape index: {}]   ;;  %s334_s2 = inlined_call_operand.hbm [shape: bf16[64,128], index: 2, kind: output, shape index: {}]  }
   0x1   :  { %v265_v0 = vld [vmem:[%s333_s1 + $0x8] sm:$0xff]   ;;  %v266_v1 = vld [vmem:[%s333_s1] sm:$0xff]   ;;  %v268_v3 = vld [vmem:[%s332_s0 + $0x10] sm:$0xff]  }
   0x2   :  { %246 = vmatprep.subr.bf16.mxu0 %v265_v0  ;;  %258 = vmatprep.subr.bf16.mxu1 %v265_v0  ;;  %v267_v2 = vld [vmem:[%s332_s0] sm:$0xff]   ;;  %v269_v4 = vld [vmem:[%s332_s0 + $0x8] sm:$0xff]   ;;  %v270_v5 = vld [vmem:[%s332_s0 + $0x18] sm:$0xff]  }
   0x3   :  { %247 = vmatpush3.bf16.msra.mxu0 %v265_v0  ;;  %260 = vmatpush3.bf16.msra.mxu1 %v265_v0 }
   0x4   :  { %248 = vmatprep.subr.bf16.mxu0 %v266_v1  ;;  %259 = vmatprep.subr.bf16.mxu1 %v266_v1 }
   0x5   :  { %250 = vmatprep.mubr.msk.bf16.mxu0 %vm57_vm0, %v267_v2  ;;  %254 = vmatprep.mubr.msk.bf16.mxu1 %vm57_vm0, %v268_v3 }
   0x6   :  { %7 = vsyncpa [#allocation3], 0  ;;  %s293_s20 = smov [#allocation2]  }
   0x7   :  { %249 = vmatpush3.bf16.msra.mxu0 %v266_v1  ;;  %261 = vmatpush3.bf16.msra.mxu1 %v266_v1  ;;  %s180_s21 = sshll.u32 %s293_s20, 4  ;;  %s181_s21 = int_to_ptr.vmem [resolvable:$true] %s180_s21 }
   0x8   :  { %s271_s0 = scalar_lea.vmem %s181_s21, 512  ;;  %p276_p1 = scmp.lt.s32.totalorder %s181_s21, %s181_s21 }
   0x9   :  { %p272_p0 = scmp.ne.s32.totalorder %s181_s21, %s271_s0  ;;  %p277_p2 = scmp.lt.s32.totalorder %s271_s0, %s271_s0 }
   0xa   :  { %251 = vmatmul.mubr.msk.bf16.vlgmr.msra.gmra.mxu0 %vm57_vm0, %v269_v4  ;;  %255 = vmatmul.mubr.msk.bf16.vlgmr.msra.gmra.mxu1 %vm57_vm0, %v270_v5 }
   0xb   :  { %p278_p3 = por %p277_p2, %p276_p1 }
   0xd   :  { %p279_p4 = pnand %p278_p3, %p272_p0 }
  0xca   :  { %v252_v6 = vpop.f32.mrf.mxu0  ;;  %v256_v7 = vpop.f32.mrf.mxu1 }
  0xcc   :  { %v104_v8 = vpop.f32.mrf.mxu0  ;;  %v120_v9 = vpop.f32.mrf.mxu1 }
  0xce   :  { %v253_v10 = vpop.f32.mrf.mxu0  ;;  %v257_v11 = vpop.f32.mrf.mxu1 }
  0xcf   :  { %v225_v12 = vpack.c.bf16 %v253_v10, %v252_v6  ;;  %v235_v13 = vpack.c.bf16 %v257_v11, %v256_v7 }
  0xd0   :  { %v107_v14 = vpop.f32.mrf.mxu0  ;;  %v123_v15 = vpop.f32.mrf.mxu1 }
  0xd1   :  { %237 = vst [vmem:[#allocation2 + $0x8] sm:$0xff] %v225_v12   ;;  %239 = vst [vmem:[#allocation2 + $0x18] sm:$0xff] %v235_v13   ;;  %v220_v16 = vpack.c.bf16 %v107_v14, %v104_v8  ;;  %v230_v17 = vpack.c.bf16 %v123_v15, %v120_v9 }
  0xd3   :  { %221 = vst [vmem:[#allocation2] sm:$0xff] %v220_v16   ;;  %238 = vst [vmem:[#allocation2 + $0x10] sm:$0xff] %v230_v17  }
  0xd4   :  { %282 = shalt.err (!%p279_p4)
}
  0xd5   :  { %s294_s22 = smov 64   ;;  %s295_s23 = smov 4  }
  0xd6   :  { %186 = dma.vmem_to_hbm [thread:$0]  %s181_s21, 512, %s334_s2, [#allocation3], %s294_s22, %s294_s22, %s295_s23  }
  0xd7   :  { %291 = dma.done.wait [#allocation3], 512  }
  0xd8   :  { %292 = vsyncadd [#allocation3], 4294966784 }
  0xd9   :  { %190 = vsyncpa [#allocation3], 1 }

</bundles_post_ra>
